<compile_context>
chip_gen: v7x
topology: tpu7x:2x2x1
jax: 0.10.0
libtpu: 0.0.40
codegen_flags: <defaults>
</compile_context>

<pallas_src>
import functools

import jax
import jax.numpy as jnp
from jax.experimental import pallas as pl
from jax.experimental.pallas import tpu as pltpu


def _concat_kernel(ts_ref,            # scalar prefetch: (B,) int32 time steps (SMEM)
                   patch_ref,         # (Bt, S, Dp) block
                   attrs_ref,         # (B, 3) full block: [speed, steering, accel]
                   table_ref,         # (T, A) time-embedding table
                   w1_ref, b1_ref,    # (3, 1, H) each      (Linear(1, H), H = 32)
                   w2_ref,            # (3, A, H)           (Linear(H, A).weight, torch layout)
                   b2_ref,            # (3, 1, A)
                   mtok_ref,          # (1, A) mask token
                   out_ref,           # (Bt, S, Dp + 4A) block
                   emb_scr,           # (Bt, 4A) VMEM scratch
                   *, mask_attr: bool):
    Bt, S, Dp = patch_ref.shape
    A = table_ref.shape[1]
    B_full = attrs_ref.shape[0]

    bt0 = pl.multiple_of(pl.program_id(0) * Bt, Bt)   # first batch row of this block

    # ---- scalar attributes for this batch block (tiny) -----------------------
    if Bt == B_full:                      # single-block case: static full read
        attrs = attrs_ref[...]
    else:
        attrs = attrs_ref[pl.ds(bt0, Bt), :]          # (Bt, 3)

    # ---- scalar MLPs, batched over the block, all on the VPU (exact f32) -----
    def scalar_mlp(i):
        x = attrs[:, i:i + 1]                                        # (Bt, 1)
        h = jnp.maximum(x * w1_ref[i] + b1_ref[i], 0.0)              # (Bt, H)
        # Linear(H, A): broadcast-multiply + lane-reduction (no MXU pass).
        y = jnp.sum(h[:, None, :] * w2_ref[i][None, :, :], axis=-1)  # (Bt, A)
        return y + b2_ref[i]                                         # (Bt, A)

    emb_scr[:, 0:A] = scalar_mlp(0)                   # speed
    if mask_attr:                                     # static flag
        mtok = jnp.broadcast_to(mtok_ref[...], (Bt, A))
        emb_scr[:, A:2 * A] = mtok                    # steering  -> mask token
        emb_scr[:, 2 * A:3 * A] = mtok                # accel     -> mask token
    else:
        emb_scr[:, A:2 * A] = scalar_mlp(1)           # steering
        emb_scr[:, 2 * A:3 * A] = scalar_mlp(2)       # acceleration

    # ---- time embedding: SMEM-indexed row gather from the table --------------
    def gather_row(b):
        t_idx = ts_ref[bt0 + b]
        emb_scr[pl.ds(b, 1), 3 * A:] = table_ref[pl.ds(t_idx, 1), :]

    if Bt <= 32:                       # static unroll (static store offsets)
        for b in range(Bt):
            gather_row(b)
    else:
        def body(b, carry):
            gather_row(b)
            return carry
        jax.lax.fori_loop(0, Bt, body, 0)

    # ---- two coalesced output stores -----------------------------------------
    out_ref[:, :, 0:Dp] = patch_ref[...]
    attr_all = emb_scr[...]                                          # (Bt, 4A)
    out_ref[:, :, Dp:] = jnp.broadcast_to(
        attr_all[:, None, :], (Bt, S, 4 * A)).astype(out_ref.dtype)


def concat_forward(patch, speed, steering, acceleration, time_step,
                   table, w1s, b1s, w2s, b2s, mask_tok, *,
                   mask_attr=False, block_b=None):
    B, S, Dp = patch.shape
    T, A = table.shape
    H = w1s.shape[-1]
    Dout = Dp + 4 * A

    attrs = jnp.stack([speed, steering, acceleration], axis=1).astype(jnp.float32)  # (B, 3)
    if isinstance(time_step, int):
        ts = jnp.full((B,), time_step, jnp.int32)
    else:
        ts = jnp.asarray(time_step, jnp.int32).reshape(B)

    if block_b is None:
        # Size the batch block so in+out (double-buffered) tiles stay well under
        # the default scoped-VMEM budget (also fine for v7x's smaller 64 MiB VMEM).
        row_bytes = 4 * S * (Dp + Dout)
        cap = max(1, (8 << 20) // (2 * row_bytes))
        block_b = min(B, cap)
        while B % block_b:             # keep blocks exact (no partial blocks)
            block_b -= 1
    Bt = block_b
    nb = B // Bt

    kernel = functools.partial(_concat_kernel, mask_attr=mask_attr)

    grid_spec = pltpu.PrefetchScalarGridSpec(
        num_scalar_prefetch=1,                                 # ts -> SMEM
        grid=(nb,),
        in_specs=[
            pl.BlockSpec((Bt, S, Dp), lambda b, *_: (b, 0, 0)),   # patch (batch-blocked)
            pl.BlockSpec((B, 3), lambda b, *_: (0, 0)),           # scalar attrs (full, tiny)
            pl.BlockSpec((T, A), lambda b, *_: (0, 0)),           # time-embedding table
            pl.BlockSpec((3, 1, H), lambda b, *_: (0, 0, 0)),     # W1 of the 3 MLPs
            pl.BlockSpec((3, 1, H), lambda b, *_: (0, 0, 0)),     # b1
            pl.BlockSpec((3, A, H), lambda b, *_: (0, 0, 0)),     # W2 (torch (out,in) layout)
            pl.BlockSpec((3, 1, A), lambda b, *_: (0, 0, 0)),     # b2
            pl.BlockSpec((1, A), lambda b, *_: (0, 0)),           # mask token
        ],
        out_specs=pl.BlockSpec((Bt, S, Dout), lambda b, *_: (b, 0, 0)),
        scratch_shapes=[pltpu.VMEM((Bt, 4 * A), jnp.float32)],
    )

    return pl.pallas_call(
        kernel,
        out_shape=jax.ShapeDtypeStruct((B, S, Dout), jnp.float32),
        grid_spec=grid_spec,
        compiler_params=pltpu.CompilerParams(
            dimension_semantics=("parallel",)),
    )(ts, patch, attrs, table, w1s, b1s, w2s, b2s, mask_tok)


def reference(patch, speed, steering, acceleration, time_step,
              table, w1s, b1s, w2s, b2s, mask_tok, mask_attr=False):
    B, S, _ = patch.shape
    A = table.shape[1]

    def mlp(x, i):
        h = jnp.maximum(x[:, None] * w1s[i, 0][None, :] + b1s[i], 0.0)   # (B, H)
        y = jnp.dot(h, w2s[i].T, precision=jax.lax.Precision.HIGHEST)    # (B, A)
        return y + b2s[i]

    spd = mlp(speed, 0)
    st = mlp(steering, 1)
    ac = mlp(acceleration, 2)
    te = table[time_step]                                                # (B, A)
    if mask_attr:
        st = jnp.broadcast_to(mask_tok, st.shape)
        ac = jnp.broadcast_to(mask_tok, ac.shape)

    def exp(e):
        return jnp.broadcast_to(e[:, None, :], (B, S, A))

    return jnp.concatenate([patch, exp(spd), exp(st), exp(ac), exp(te)], axis=2)


if __name__ == "__main__":
    B, S, Dp = 2, 8, 32
    attr_dim = 16
    hidden = 32
    max_timestep = 160

    key = jax.random.PRNGKey(0)
    ks = jax.random.split(key, 10)

    # inputs
    patch = jax.random.normal(ks[0], (B, S, Dp), jnp.float32)
    speed = jax.random.normal(ks[1], (B,), jnp.float32)
    steering = jax.random.normal(ks[2], (B,), jnp.float32)
    acceleration = jax.random.normal(ks[3], (B,), jnp.float32)
    time_step = jax.random.randint(ks[4], (B,), 0, max_timestep + 1, jnp.int32)

    # deterministic synthetic parameters (shapes from the module's __init__)
    table = jax.random.normal(ks[5], (max_timestep + 1, attr_dim), jnp.float32) * 0.02
    w1s = jax.random.normal(ks[6], (3, 1, hidden), jnp.float32) * 0.5        # Linear(1,32).weight.T x3
    b1s = jax.random.normal(ks[7], (3, 1, hidden), jnp.float32) * 0.1        # Linear(1,32).bias    x3
    w2s = jax.random.normal(ks[8], (3, attr_dim, hidden), jnp.float32) * 0.2 # Linear(32,attr).weight x3
    b2s = jax.random.normal(ks[9], (3, 1, attr_dim), jnp.float32) * 0.1      # Linear(32,attr).bias   x3
    mask_tok = jnp.zeros((1, attr_dim), jnp.float32)                         # nn.Parameter(zeros(1,1,attr))

    out = concat_forward(patch, speed, steering, acceleration, time_step,
                         table, w1s, b1s, w2s, b2s, mask_tok, mask_attr=False)
    out = jax.block_until_ready(out)

    ref = reference(patch, speed, steering, acceleration, time_step,
                    table, w1s, b1s, w2s, b2s, mask_tok, mask_attr=False)

    assert out.shape == (B, S, Dp + 4 * attr_dim), out.shape
    assert jnp.allclose(out, ref, atol=1e-3, rtol=1e-3), float(jnp.max(jnp.abs(out - ref)))

    # also exercise the mask_attr=True path
    out_m = jax.block_until_ready(
        concat_forward(patch, speed, steering, acceleration, time_step,
                       table, w1s, b1s, w2s, b2s, mask_tok, mask_attr=True))
    ref_m = reference(patch, speed, steering, acceleration, time_step,
                      table, w1s, b1s, w2s, b2s, mask_tok, mask_attr=True)
    assert jnp.allclose(out_m, ref_m, atol=1e-3, rtol=1e-3)

    print("KERNEL_OK")
</pallas_src>

<mosaic_0001>
module attributes {stable_mosaic.version = 11 : i64} {
  func.func @_concat_kernel(%arg0: i32, %arg1: memref<2xi32, #tpu.memory_space<smem>>, %arg2: memref<2x8x32xf32, #tpu.memory_space<vmem>>, %arg3: memref<2x3xf32, #tpu.memory_space<vmem>>, %arg4: memref<161x16xf32, #tpu.memory_space<vmem>>, %arg5: memref<3x1x32xf32, #tpu.memory_space<vmem>>, %arg6: memref<3x1x32xf32, #tpu.memory_space<vmem>>, %arg7: memref<3x16x32xf32, #tpu.memory_space<vmem>>, %arg8: memref<3x1x16xf32, #tpu.memory_space<vmem>>, %arg9: memref<1x16xf32, #tpu.memory_space<vmem>>, %arg10: memref<2x8x96xf32, #tpu.memory_space<vmem>>, %arg11: memref<2x64xf32, #tpu.memory_space<vmem>>) attributes {dimension_semantics = [#tpu.dimension_semantics<parallel>], iteration_bounds = array<i64: 1>, scalar_prefetch = 1 : i64, scratch_operands = 1 : i64, tpu.core_type = #tpu.core_type<tc>, window_params = [{transform_indices = @transform_0, window_bounds = array<i64: 2, 8, 32>}, {pipeline_mode = #tpu.pipeline_mode<synchronous>, transform_indices = @transform_1, window_bounds = array<i64: 2, 3>}, {pipeline_mode = #tpu.pipeline_mode<synchronous>, transform_indices = @transform_2, window_bounds = array<i64: 161, 16>}, {pipeline_mode = #tpu.pipeline_mode<synchronous>, transform_indices = @transform_3, window_bounds = array<i64: 3, 1, 32>}, {pipeline_mode = #tpu.pipeline_mode<synchronous>, transform_indices = @transform_4, window_bounds = array<i64: 3, 1, 32>}, {pipeline_mode = #tpu.pipeline_mode<synchronous>, transform_indices = @transform_5, window_bounds = array<i64: 3, 16, 32>}, {pipeline_mode = #tpu.pipeline_mode<synchronous>, transform_indices = @transform_6, window_bounds = array<i64: 3, 1, 16>}, {pipeline_mode = #tpu.pipeline_mode<synchronous>, transform_indices = @transform_7, window_bounds = array<i64: 1, 16>}, {transform_indices = @transform_8, window_bounds = array<i64: 2, 8, 96>}]} {
    %c2_i32 = arith.constant 2 : i32
    %0 = arith.muli %arg0, %c2_i32 : i32
    %1 = tpu.assume_multiple %0, 2 : i32
    %c0 = arith.constant 0 : index
    %c0_0 = arith.constant 0 : index
    %2 = vector.load %arg3[%c0, %c0_0] : memref<2x3xf32, #tpu.memory_space<vmem>>, vector<2x3xf32>
    %3 = vector.extract_strided_slice %2 {offsets = [0, 0], sizes = [2, 1], strides = [1, 1]} : vector<2x3xf32> to vector<2x1xf32>
    %c0_1 = arith.constant 0 : index
    %c0_2 = arith.constant 0 : index
    %c0_3 = arith.constant 0 : index
    %4 = vector.load %arg5[%c0_1, %c0_2, %c0_3] : memref<3x1x32xf32, #tpu.memory_space<vmem>>, vector<1x1x32xf32>
    %5 = vector.shape_cast %4 : vector<1x1x32xf32> to vector<1x32xf32>
    %6 = vector.broadcast %3 : vector<2x1xf32> to vector<2x32xf32>
    %7 = vector.broadcast %5 : vector<1x32xf32> to vector<2x32xf32>
    %8 = arith.mulf %6, %7 : vector<2x32xf32>
    %c0_4 = arith.constant 0 : index
    %c0_5 = arith.constant 0 : index
    %c0_6 = arith.constant 0 : index
    %9 = vector.load %arg6[%c0_4, %c0_5, %c0_6] : memref<3x1x32xf32, #tpu.memory_space<vmem>>, vector<1x1x32xf32>
    %10 = vector.shape_cast %9 : vector<1x1x32xf32> to vector<1x32xf32>
    %11 = vector.broadcast %10 : vector<1x32xf32> to vector<2x32xf32>
    %12 = arith.addf %8, %11 : vector<2x32xf32>
    %cst = arith.constant 0.000000e+00 : f32
    %13 = vector.broadcast %cst : f32 to vector<2x32xf32>
    %14 = arith.maximumf %12, %13 : vector<2x32xf32>
    %15 = vector.shape_cast %14 : vector<2x32xf32> to vector<2x1x32xf32>
    %c0_7 = arith.constant 0 : index
    %c0_8 = arith.constant 0 : index
    %c0_9 = arith.constant 0 : index
    %16 = vector.load %arg7[%c0_7, %c0_8, %c0_9] : memref<3x16x32xf32, #tpu.memory_space<vmem>>, vector<1x16x32xf32>
    %17 = vector.shape_cast %16 : vector<1x16x32xf32> to vector<16x32xf32>
    %18 = vector.shape_cast %17 : vector<16x32xf32> to vector<1x16x32xf32>
    %19 = vector.broadcast %15 : vector<2x1x32xf32> to vector<2x16x32xf32>
    %20 = vector.broadcast %18 : vector<1x16x32xf32> to vector<2x16x32xf32>
    %21 = arith.mulf %19, %20 : vector<2x16x32xf32>
    %cst_10 = arith.constant dense<0.000000e+00> : vector<2x16xf32>
    %22 = vector.multi_reduction <add>, %21, %cst_10 [2] : vector<2x16x32xf32> to vector<2x16xf32>
    %c0_11 = arith.constant 0 : index
    %c0_12 = arith.constant 0 : index
    %c0_13 = arith.constant 0 : index
    %23 = vector.load %arg8[%c0_11, %c0_12, %c0_13] : memref<3x1x16xf32, #tpu.memory_space<vmem>>, vector<1x1x16xf32>
    %24 = vector.shape_cast %23 : vector<1x1x16xf32> to vector<1x16xf32>
    %25 = vector.broadcast %24 : vector<1x16xf32> to vector<2x16xf32>
    %26 = arith.addf %22, %25 : vector<2x16xf32>
    %c0_14 = arith.constant 0 : index
    %c0_15 = arith.constant 0 : index
    %27 = vector.load %arg11[%c0_14, %c0_15] : memref<2x64xf32, #tpu.memory_space<vmem>>, vector<2x16xf32>
    tpu.vector_store %arg11[%c0_14, %c0_15], %26 {strides = array<i32>} : memref<2x64xf32, #tpu.memory_space<vmem>>, vector<2x16xf32>,
    %28 = vector.extract_strided_slice %2 {offsets = [0, 1], sizes = [2, 1], strides = [1, 1]} : vector<2x3xf32> to vector<2x1xf32>
    %c1 = arith.constant 1 : index
    %c0_16 = arith.constant 0 : index
    %c0_17 = arith.constant 0 : index
    %29 = vector.load %arg5[%c1, %c0_16, %c0_17] : memref<3x1x32xf32, #tpu.memory_space<vmem>>, vector<1x1x32xf32>
    %30 = vector.shape_cast %29 : vector<1x1x32xf32> to vector<1x32xf32>
    %31 = vector.broadcast %28 : vector<2x1xf32> to vector<2x32xf32>
    %32 = vector.broadcast %30 : vector<1x32xf32> to vector<2x32xf32>
    %33 = arith.mulf %31, %32 : vector<2x32xf32>
    %c1_18 = arith.constant 1 : index
    %c0_19 = arith.constant 0 : index
    %c0_20 = arith.constant 0 : index
    %34 = vector.load %arg6[%c1_18, %c0_19, %c0_20] : memref<3x1x32xf32, #tpu.memory_space<vmem>>, vector<1x1x32xf32>
    %35 = vector.shape_cast %34 : vector<1x1x32xf32> to vector<1x32xf32>
    %36 = vector.broadcast %35 : vector<1x32xf32> to vector<2x32xf32>
    %37 = arith.addf %33, %36 : vector<2x32xf32>
    %cst_21 = arith.constant 0.000000e+00 : f32
    %38 = vector.broadcast %cst_21 : f32 to vector<2x32xf32>
    %39 = arith.maximumf %37, %38 : vector<2x32xf32>
    %40 = vector.shape_cast %39 : vector<2x32xf32> to vector<2x1x32xf32>
    %c1_22 = arith.constant 1 : index
    %c0_23 = arith.constant 0 : index
    %c0_24 = arith.constant 0 : index
    %41 = vector.load %arg7[%c1_22, %c0_23, %c0_24] : memref<3x16x32xf32, #tpu.memory_space<vmem>>, vector<1x16x32xf32>
    %42 = vector.shape_cast %41 : vector<1x16x32xf32> to vector<16x32xf32>
    %43 = vector.shape_cast %42 : vector<16x32xf32> to vector<1x16x32xf32>
    %44 = vector.broadcast %40 : vector<2x1x32xf32> to vector<2x16x32xf32>
    %45 = vector.broadcast %43 : vector<1x16x32xf32> to vector<2x16x32xf32>
    %46 = arith.mulf %44, %45 : vector<2x16x32xf32>
    %cst_25 = arith.constant dense<0.000000e+00> : vector<2x16xf32>
    %47 = vector.multi_reduction <add>, %46, %cst_25 [2] : vector<2x16x32xf32> to vector<2x16xf32>
    %c1_26 = arith.constant 1 : index
    %c0_27 = arith.constant 0 : index
    %c0_28 = arith.constant 0 : index
    %48 = vector.load %arg8[%c1_26, %c0_27, %c0_28] : memref<3x1x16xf32, #tpu.memory_space<vmem>>, vector<1x1x16xf32>
    %49 = vector.shape_cast %48 : vector<1x1x16xf32> to vector<1x16xf32>
    %50 = vector.broadcast %49 : vector<1x16xf32> to vector<2x16xf32>
    %51 = arith.addf %47, %50 : vector<2x16xf32>
    %c0_29 = arith.constant 0 : index
    %c16 = arith.constant 16 : index
    %52 = vector.load %arg11[%c0_29, %c16] : memref<2x64xf32, #tpu.memory_space<vmem>>, vector<2x16xf32>
    tpu.vector_store %arg11[%c0_29, %c16], %51 {strides = array<i32>} : memref<2x64xf32, #tpu.memory_space<vmem>>, vector<2x16xf32>,
    %53 = vector.extract_strided_slice %2 {offsets = [0, 2], sizes = [2, 1], strides = [1, 1]} : vector<2x3xf32> to vector<2x1xf32>
    %c2 = arith.constant 2 : index
    %c0_30 = arith.constant 0 : index
    %c0_31 = arith.constant 0 : index
    %54 = vector.load %arg5[%c2, %c0_30, %c0_31] : memref<3x1x32xf32, #tpu.memory_space<vmem>>, vector<1x1x32xf32>
    %55 = vector.shape_cast %54 : vector<1x1x32xf32> to vector<1x32xf32>
    %56 = vector.broadcast %53 : vector<2x1xf32> to vector<2x32xf32>
    %57 = vector.broadcast %55 : vector<1x32xf32> to vector<2x32xf32>
    %58 = arith.mulf %56, %57 : vector<2x32xf32>
    %c2_32 = arith.constant 2 : index
    %c0_33 = arith.constant 0 : index
    %c0_34 = arith.constant 0 : index
    %59 = vector.load %arg6[%c2_32, %c0_33, %c0_34] : memref<3x1x32xf32, #tpu.memory_space<vmem>>, vector<1x1x32xf32>
    %60 = vector.shape_cast %59 : vector<1x1x32xf32> to vector<1x32xf32>
    %61 = vector.broadcast %60 : vector<1x32xf32> to vector<2x32xf32>
    %62 = arith.addf %58, %61 : vector<2x32xf32>
    %cst_35 = arith.constant 0.000000e+00 : f32
    %63 = vector.broadcast %cst_35 : f32 to vector<2x32xf32>
    %64 = arith.maximumf %62, %63 : vector<2x32xf32>
    %65 = vector.shape_cast %64 : vector<2x32xf32> to vector<2x1x32xf32>
    %c2_36 = arith.constant 2 : index
    %c0_37 = arith.constant 0 : index
    %c0_38 = arith.constant 0 : index
    %66 = vector.load %arg7[%c2_36, %c0_37, %c0_38] : memref<3x16x32xf32, #tpu.memory_space<vmem>>, vector<1x16x32xf32>
    %67 = vector.shape_cast %66 : vector<1x16x32xf32> to vector<16x32xf32>
    %68 = vector.shape_cast %67 : vector<16x32xf32> to vector<1x16x32xf32>
    %69 = vector.broadcast %65 : vector<2x1x32xf32> to vector<2x16x32xf32>
    %70 = vector.broadcast %68 : vector<1x16x32xf32> to vector<2x16x32xf32>
    %71 = arith.mulf %69, %70 : vector<2x16x32xf32>
    %cst_39 = arith.constant dense<0.000000e+00> : vector<2x16xf32>
    %72 = vector.multi_reduction <add>, %71, %cst_39 [2] : vector<2x16x32xf32> to vector<2x16xf32>
    %c2_40 = arith.constant 2 : index
    %c0_41 = arith.constant 0 : index
    %c0_42 = arith.constant 0 : index
    %73 = vector.load %arg8[%c2_40, %c0_41, %c0_42] : memref<3x1x16xf32, #tpu.memory_space<vmem>>, vector<1x1x16xf32>
    %74 = vector.shape_cast %73 : vector<1x1x16xf32> to vector<1x16xf32>
    %75 = vector.broadcast %74 : vector<1x16xf32> to vector<2x16xf32>
    %76 = arith.addf %72, %75 : vector<2x16xf32>
    %c0_43 = arith.constant 0 : index
    %c32 = arith.constant 32 : index
    %77 = vector.load %arg11[%c0_43, %c32] : memref<2x64xf32, #tpu.memory_space<vmem>>, vector<2x16xf32>
    tpu.vector_store %arg11[%c0_43, %c32], %76 {strides = array<i32>} : memref<2x64xf32, #tpu.memory_space<vmem>>, vector<2x16xf32>,
    %c0_i32 = arith.constant 0 : i32
    %78 = arith.addi %1, %c0_i32 : i32
    %79 = arith.index_cast %78 : i32 to index
    %80 = memref.load %arg1[%79] : memref<2xi32, #tpu.memory_space<smem>>
    %81 = arith.index_cast %80 : i32 to index
    %c0_44 = arith.constant 0 : index
    %82 = vector.load %arg4[%81, %c0_44] : memref<161x16xf32, #tpu.memory_space<vmem>>, vector<1x16xf32>
    %c0_45 = arith.constant 0 : index
    %c48 = arith.constant 48 : index
    %83 = vector.load %arg11[%c0_45, %c48] : memref<2x64xf32, #tpu.memory_space<vmem>>, vector<1x16xf32>
    tpu.vector_store %arg11[%c0_45, %c48], %82 {strides = array<i32>} : memref<2x64xf32, #tpu.memory_space<vmem>>, vector<1x16xf32>,
    %c1_i32 = arith.constant 1 : i32
    %84 = arith.addi %1, %c1_i32 : i32
    %85 = arith.index_cast %84 : i32 to index
    %86 = memref.load %arg1[%85] : memref<2xi32, #tpu.memory_space<smem>>
    %87 = arith.index_cast %86 : i32 to index
    %c0_46 = arith.constant 0 : index
    %88 = vector.load %arg4[%87, %c0_46] : memref<161x16xf32, #tpu.memory_space<vmem>>, vector<1x16xf32>
    %c1_47 = arith.constant 1 : index
    %c48_48 = arith.constant 48 : index
    %89 = vector.load %arg11[%c1_47, %c48_48] : memref<2x64xf32, #tpu.memory_space<vmem>>, vector<1x16xf32>
    tpu.vector_store %arg11[%c1_47, %c48_48], %88 {strides = array<i32>} : memref<2x64xf32, #tpu.memory_space<vmem>>, vector<1x16xf32>,
    %c0_49 = arith.constant 0 : index
    %c0_50 = arith.constant 0 : index
    %c0_51 = arith.constant 0 : index
    %90 = vector.load %arg2[%c0_49, %c0_50, %c0_51] : memref<2x8x32xf32, #tpu.memory_space<vmem>>, vector<2x8x32xf32>
    %c0_52 = arith.constant 0 : index
    %c0_53 = arith.constant 0 : index
    %c0_54 = arith.constant 0 : index
    %91 = vector.load %arg10[%c0_52, %c0_53, %c0_54] : memref<2x8x96xf32, #tpu.memory_space<vmem>>, vector<2x8x32xf32>
    tpu.vector_store %arg10[%c0_52, %c0_53, %c0_54], %90 {strides = array<i32>} : memref<2x8x96xf32, #tpu.memory_space<vmem>>, vector<2x8x32xf32>,
    %c0_55 = arith.constant 0 : index
    %c0_56 = arith.constant 0 : index
    %92 = vector.load %arg11[%c0_55, %c0_56] : memref<2x64xf32, #tpu.memory_space<vmem>>, vector<2x64xf32>
    %93 = vector.shape_cast %92 : vector<2x64xf32> to vector<2x1x64xf32>
    %94 = vector.shape_cast %93 : vector<2x1x64xf32> to vector<2x1x64xf32>
    %95 = vector.broadcast %94 : vector<2x1x64xf32> to vector<2x8x64xf32>
    %c0_57 = arith.constant 0 : index
    %c0_58 = arith.constant 0 : index
    %c32_59 = arith.constant 32 : index
    %96 = vector.load %arg10[%c0_57, %c0_58, %c32_59] : memref<2x8x96xf32, #tpu.memory_space<vmem>>, vector<2x8x64xf32>
    tpu.vector_store %arg10[%c0_57, %c0_58, %c32_59], %95 {strides = array<i32>} : memref<2x8x96xf32, #tpu.memory_space<vmem>>, vector<2x8x64xf32>,
    return
  }
  func.func @transform_0(%arg0: i32, %arg1: memref<2xi32, #tpu.memory_space<smem>>) -> (i32, i32, i32) {
    %c0_i32 = arith.constant 0 : i32
    %c0_i32_0 = arith.constant 0 : i32
    %c0_i32_1 = arith.constant 0 : i32
    return %arg0, %c0_i32, %c0_i32_0 : i32, i32, i32
  }
  func.func @transform_1(%arg0: i32, %arg1: memref<2xi32, #tpu.memory_space<smem>>) -> (i32, i32) {
    %c0_i32 = arith.constant 0 : i32
    %c0_i32_0 = arith.constant 0 : i32
    %c0_i32_1 = arith.constant 0 : i32
    return %c0_i32, %c0_i32_0 : i32, i32
  }
  func.func @transform_2(%arg0: i32, %arg1: memref<2xi32, #tpu.memory_space<smem>>) -> (i32, i32) {
    %c0_i32 = arith.constant 0 : i32
    %c0_i32_0 = arith.constant 0 : i32
    %c0_i32_1 = arith.constant 0 : i32
    return %c0_i32, %c0_i32_0 : i32, i32
  }
  func.func @transform_3(%arg0: i32, %arg1: memref<2xi32, #tpu.memory_space<smem>>) -> (i32, i32, i32) {
    %c0_i32 = arith.constant 0 : i32
    %c0_i32_0 = arith.constant 0 : i32
    %c0_i32_1 = arith.constant 0 : i32
    %c0_i32_2 = arith.constant 0 : i32
    return %c0_i32, %c0_i32_0, %c0_i32_1 : i32, i32, i32
  }
  func.func @transform_4(%arg0: i32, %arg1: memref<2xi32, #tpu.memory_space<smem>>) -> (i32, i32, i32) {
    %c0_i32 = arith.constant 0 : i32
    %c0_i32_0 = arith.constant 0 : i32
    %c0_i32_1 = arith.constant 0 : i32
    %c0_i32_2 = arith.constant 0 : i32
    return %c0_i32, %c0_i32_0, %c0_i32_1 : i32, i32, i32
  }
  func.func @transform_5(%arg0: i32, %arg1: memref<2xi32, #tpu.memory_space<smem>>) -> (i32, i32, i32) {
    %c0_i32 = arith.constant 0 : i32
    %c0_i32_0 = arith.constant 0 : i32
    %c0_i32_1 = arith.constant 0 : i32
    %c0_i32_2 = arith.constant 0 : i32
    return %c0_i32, %c0_i32_0, %c0_i32_1 : i32, i32, i32
  }
  func.func @transform_6(%arg0: i32, %arg1: memref<2xi32, #tpu.memory_space<smem>>) -> (i32, i32, i32) {
    %c0_i32 = arith.constant 0 : i32
    %c0_i32_0 = arith.constant 0 : i32
    %c0_i32_1 = arith.constant 0 : i32
    %c0_i32_2 = arith.constant 0 : i32
    return %c0_i32, %c0_i32_0, %c0_i32_1 : i32, i32, i32
  }
  func.func @transform_7(%arg0: i32, %arg1: memref<2xi32, #tpu.memory_space<smem>>) -> (i32, i32) {
    %c0_i32 = arith.constant 0 : i32
    %c0_i32_0 = arith.constant 0 : i32
    %c0_i32_1 = arith.constant 0 : i32
    return %c0_i32, %c0_i32_0 : i32, i32
  }
  func.func @transform_8(%arg0: i32, %arg1: memref<2xi32, #tpu.memory_space<smem>>) -> (i32, i32, i32) {
    %c0_i32 = arith.constant 0 : i32
    %c0_i32_0 = arith.constant 0 : i32
    %c0_i32_1 = arith.constant 0 : i32
    return %arg0, %c0_i32, %c0_i32_0 : i32, i32, i32
  }
}

</mosaic_0001>

<bundles_post_ra>
// kernel: tpu_custom_call.1
= control target key start
LH: loop header
LB: loop body
LE: loop exit
PB: predicated region body
PF: predicated region fallthrough
CT: control target
= control target key end

     0   :  { %s789_s0 = inlined_call_operand.vmem [shape: s32[2], index: 0, kind: input, shape index: {}]   ;;  %s790_s1 = inlined_call_operand.vmem [shape: f32[2,8,32], index: 1, kind: input, shape index: {}]   ;;  %s791_s2 = inlined_call_operand.vmem [shape: f32[2,3], index: 2, kind: input, shape index: {}]   ;;  %s792_s3 = inlined_call_operand.vmem [shape: f32[161,16], index: 3, kind: input, shape index: {}]   ;;  %s793_s4 = inlined_call_operand.vmem [shape: f32[3,1,32], index: 4, kind: input, shape index: {}]   ;;  %s794_s5 = inlined_call_operand.vmem [shape: f32[3,1,32], index: 5, kind: input, shape index: {}]   ;;  %s795_s6 = inlined_call_operand.vmem [shape: f32[3,16,32], index: 6, kind: input, shape index: {}]   ;;  %s796_s7 = inlined_call_operand.vmem [shape: f32[3,1,16], index: 7, kind: input, shape index: {}]   ;;  %s797_s8 = inlined_call_operand.vmem [shape: f32[1,16], index: 8, kind: input, shape index: {}]   ;;  %s798_s9 = inlined_call_operand.hbm [shape: f32[2,8,96], index: 9, kind: output, shape index: {}]  }
   0x1   :  { %s14_s11 = sshll.u32 %s789_s0, 4  ;;  %s15_s11 = int_to_ptr.vmem [resolvable:$true] %s14_s11 }
   0x2   :  { %s564_s12 = scalar_lea.vmem %s15_s11, 16  ;;  %p569_p1 = scmp.lt.s32.totalorder %s15_s11, %s15_s11 }
   0x3   :  { %p565_p0 = scmp.ne.s32.totalorder %s15_s11, %s564_s12  ;;  %p570_p2 = scmp.lt.s32.totalorder %s564_s12, %s564_s12 }
   0x5   :  { %p571_p3 = por %p570_p2, %p569_p1 }
   0x7   :  { %p572_p4 = pnand %p571_p3, %p565_p0 }
   0x9   :  { %575 = shalt.err (!%p572_p4)  }
   0xa   :  { %s602_s13 = smov [#allocation4]  }
   0xb   :  { %17 = dma.vmem_to_smem %s15_s11, 16, %s602_s13, [#allocation3] }
   0xc   :  { %598 = dma.done.wait [#allocation3], 16 }
   0xd   :  { %599 = vsyncadd [#allocation3], 4294967280 }
   0xe   :  { %19 = sfence }
   0xf   :  { %v38_v0 = vld [vmem:[%s791_s2] sm:$0x3]  ;;  %v603_v1 = vmov 0   ;;  %v604_v2 = vmov 2  }
  0x10   :  { %559 = vset.pattern.permute.xlu0 %v603_v1  ;;  %561 = vset.pattern.permute.xlu1 %v604_v2  ;;  %v530_v3 = vld [vmem:[%s796_s7] ss:$0 sm:$0xff] }
  0x11   :  { %42 = vperm.xlu0 %559, %v38_v0   ;;  %314 = vperm.xlu1 %561, %v38_v0  }
  0x12   :  { %20 = vsyncpa [#allocation6], 0  ;;  %v605_v4 = vmov 1   ;;  %v538_v5 = vld [vmem:[%s796_s7 + $0x1] ss:$0 sm:$0xff]  ;;  %v65_v8 = vlaneseq  ;;  %v85_v34 = vld [vmem:[%s795_s6 + $0x8] sm:$0xff] }
  0x13   :  { %v606_v6 = vmov 1966171168   ;;  %v528_v9 = vld [vmem:[%s793_s4] ss:$0 sm:$0xff]  ;;  %v540_v10 = vld [vmem:[%s793_s4 + $0x2] ss:$0 sm:$0xff] }
  0x14   :  { %v63_v7 = vunpack.c.l.s4 %v606_v6  ;;  %v681_v12 = vshrl.u32 %v65_v8, 7  ;;  %v529_v13 = vld [vmem:[%s794_s5] ss:$0 sm:$0xff]  ;;  %v542_v15 = vld [vmem:[%s794_s5 + $0x2] ss:$0 sm:$0xff]  ;;  %vm100_vm0 = vcmask 261120  }
  0x15   :  { %560 = vset.pattern.permute.xlu0 %v605_v4  ;;  %120 = vbcast.lane.b32.xlu1 %v530_v3, 256  ;;  %v532_v21 = vld [vmem:[%s793_s4 + $0x1] ss:$0 sm:$0xff]  ;;  %v536_v43 = vld [vmem:[%s795_s6 + $0x18] sm:$0xff]  ;;  %v535_v47 = vld [vmem:[%s795_s6 + $0x10] sm:$0xff]  ;;  %s447_s17 = sld [smem:[#allocation4]] }
  0x16   :  { %178 = vperm.xlu0 %560, %v38_v0   ;;  %563 = vset.pattern.permute.xlu1 %v603_v1  ;;  %v64_v11 = vunpack.c.0.s8 %v63_v7  ;;  %v534_v24 = vld [vmem:[%s794_s5 + $0x1] ss:$0 sm:$0xff]  ;;  %v701_v30 = vsub.s32 0, %v681_v12  ;;  %v544_v48 = vld [vmem:[%s795_s6 + $0x28] sm:$0xff]  ;;  %s607_s23 = smov 48   ;;  %vm159_vm1 = vcmask 130112  }
  0x17   :  { %v84_v35 = vld [vmem:[%s795_s6] sm:$0xff]  ;;  %vm170_vm2 = vcmask 1041409   ;;  %vm173_vm3 = vcmask 123904   ;;  %vm296_vm4 = vcmask 261312   ;;  %vm309_vm5 = vcmask 255104   ;;  %s608_s27 = smov 32  }
  0x18   :  { %v690_v19 = vsub.s32 %v64_v11, %v681_v12  ;;  %v543_v49 = vld [vmem:[%s795_s6 + $0x20] sm:$0xff]  ;;  %vm432_vm6 = vcmask 392512   ;;  %vm445_vm7 = vcmask 386304   ;;  %vm454_vm8 = vcmask 516480   ;;  %s609_s28 = smov [#allocation5]  }
  0x19   :  { %258 = vbcast.lane.b32.xlu1 %v538_v5, 256  ;;  %vm507_vm9 = vcmask 785664  }
  0x1a   :  { %124 = vbcast.lane.b32.xlu0 %v530_v3, 264 }
  0x1b   :  { %562 = vset.pattern.permute.xlu0 %v603_v1  ;;  %s448_s22 = scalar_lea.vmem %s792_s3, %s447_s17 }
  0x1d   :  { %262 = vbcast.lane.b32.xlu1 %v538_v5, 264 }
  0x90   :  { %v43_v14 = vpop.permute.xlu0 %42  ;;  %v315_v16 = vpop.permute.xlu1 %314 }
  0x91   :  { %v51_v17 = vmul.f32 %v528_v9, %v43_v14  ;;  %v323_v18 = vmul.f32 %v540_v10, %v315_v16 }
  0x93   :  { %v59_v20 = vadd.f32 %v529_v13, %v51_v17  ;;  %v332_v22 = vadd.f32 %v542_v15, %v323_v18  ;;  %v546_v17 = vld [vmem:[%s796_s7 + $0x2] ss:$0 sm:$0xff]  ;;  %s547_s7 = sld [smem:[#allocation4 + $0x1]] }
  0x94   :  { %v121_v18 = vpop.permute.xlu1 %120 }
  0x95   :  { %v60_v23 = vmax.f32 %v59_v20, 0.0  ;;  %v179_v25 = vpop.permute.xlu0 %178  ;;  %v333_v26 = vmax.f32 %v332_v22, 0.0 }
  0x96   :  { %v187_v27 = vmul.f32 %v532_v21, %v179_v25 }
  0x97   :  { %v68_v28 = vrot.slane %v60_v23, %v690_v19  ;;  %v341_v29 = vrot.slane %v333_v26, %v690_v19 }
  0x98   :  { %v196_v31 = vadd.f32 %v534_v24, %v187_v27  ;;  %v259_v20 = vpop.permute.xlu1 %258 }
  0x99   :  { %v76_v32 = vrot.slane %v68_v28, %v690_v19  ;;  %v349_v36 = vrot.slane %v341_v29, %v690_v19  ;;  %v69_v38 = vcombine.high %v68_v28, %v68_v28  ;;  %v342_v57 = vcombine.high %v341_v29, %v341_v29  ;;  %v125_v22 = vpop.permute.xlu0 %124  ;;  %s458_s19 = scalar_lea.vmem %s792_s3, %s547_s7 }
  0x9a   :  { %v197_v33 = vmax.f32 %v196_v31, 0.0 }
  0x9b   :  { %v89_v37 = vrot.slane %v76_v32, %v701_v30  ;;  %v363_v44 = vrot.slane %v349_v36, %v701_v30  ;;  %v83_v52 = vrot.slane %v69_v38, %v690_v19  ;;  %v356_v0 = vrot.slane %v342_v57, %v690_v19 }
  0x9c   :  { %v205_v39 = vrot.slane %v197_v33, %v690_v19  ;;  %v263_v21 = vpop.permute.xlu1 %262 }
  0x9d   :  { %v97_v40 = vmul.f32 %v89_v37, %v85_v34  ;;  %v96_v41 = vmul.f32 %v89_v37, %v84_v35  ;;  %v371_v55 = vmul.f32 %v544_v48, %v363_v44  ;;  %v370_v56 = vmul.f32 %v543_v49, %v363_v44 }
  0x9e   :  { %v213_v42 = vrot.slane %v205_v39, %v690_v19  ;;  %v206_v50 = vcombine.high %v205_v39, %v205_v39  ;;  %v93_v60 = vrot.slane %v83_v52, %v701_v30  ;;  %v367_v4 = vrot.slane %v356_v0, %v701_v30  ;;  %v465_v52 = vld [vmem:[%s790_s1] sm:$0xff] }
  0x9f   :  { %v104_v45 = vsel %vm100_vm0, %v97_v40, 0.0  ;;  %v101_v46 = vsel %vm100_vm0, %v96_v41, 0.0  ;;  %v377_v62 = vsel %vm100_vm0, %v371_v55, 0.0  ;;  %v374_v63 = vsel %vm100_vm0, %v370_v56, 0.0  ;;  %467 = vst.msk [vmem:[#allocation5] sm:$0xff] %vm100_vm0, %v465_v52 }
  0xa0   :  { %105 = vadd.xlane.f32.xlu0 %v104_v45  ;;  %102 = vadd.xlane.f32.xlu1 %v101_v46  ;;  %v227_v51 = vrot.slane %v213_v42, %v701_v30  ;;  %v220_v61 = vrot.slane %v206_v50, %v690_v19  ;;  %v99_v1 = vmul.f32 %v93_v60, %v85_v34  ;;  %v459_v50 = vld [vmem:[%s458_s19] sm:$0x1]  ;;  %v149_v55 = vand.u32 127, %v65_v8 }
  0xa1   :  { %v98_v2 = vmul.f32 %v93_v60, %v84_v35  ;;  %v373_v13 = vmul.f32 %v544_v48, %v367_v4  ;;  %v372_v14 = vmul.f32 %v543_v49, %v367_v4 }
  0xa2   :  { %v235_v53 = vmul.f32 %v536_v43, %v227_v51  ;;  %v234_v54 = vmul.f32 %v535_v47, %v227_v51  ;;  %v231_v3 = vrot.slane %v220_v61, %v701_v30  ;;  %v110_v5 = vsel %vm100_vm0, %v99_v1, 0.0  ;;  %v449_v51 = vld [vmem:[%s448_s22] sm:$0x1] }
  0xa3   :  { %v107_v6 = vsel %vm100_vm0, %v98_v2, 0.0  ;;  %v383_v15 = vsel %vm100_vm0, %v373_v13, 0.0  ;;  %v380_v16 = vsel %vm100_vm0, %v372_v14, 0.0  ;;  %v154_v56 = vadd.s32 4294967288, %v149_v55 }
  0xa4   :  { %v241_v58 = vsel %vm100_vm0, %v235_v53, 0.0  ;;  %v238_v59 = vsel %vm100_vm0, %v234_v54, 0.0  ;;  %v237_v7 = vmul.f32 %v536_v43, %v231_v3  ;;  %v236_v9 = vmul.f32 %v535_v47, %v231_v3 }
  0xa5   :  { %242 = vadd.xlane.f32.xlu0 %v241_v58  ;;  %239 = vadd.xlane.f32.xlu1 %v238_v59  ;;  %v157_v59 = vsub.s32 %v154_v56, %v681_v12  ;;  %v152_v60 = vsub.s32 %v149_v55, %v681_v12  ;;  %v286_v61 = vadd.s32 4294967280, %v149_v55  ;;  %v422_v1 = vadd.s32 4294967264, %v149_v55 }
  0xa6   :  { %v247_v10 = vsel %vm100_vm0, %v237_v7, 0.0  ;;  %v244_v11 = vsel %vm100_vm0, %v236_v9, 0.0  ;;  %v427_v2 = vadd.s32 4294967256, %v149_v55 }
  0xa8   :  { %v430_v13 = vsub.s32 %v427_v2, %v681_v12 }
  0xa9   :  { %378 = vadd.xlane.f32.xlu0 %v377_v62  ;;  %375 = vadd.xlane.f32.xlu1 %v374_v63  ;;  %v291_v62 = vadd.s32 4294967272, %v149_v55 }
  0xad   :  { %111 = vadd.xlane.f32.xlu0 %v110_v5  ;;  %108 = vadd.xlane.f32.xlu1 %v107_v6  ;;  %v289_v5 = vsub.s32 %v286_v61, %v681_v12  ;;  %v294_v6 = vsub.s32 %v291_v62, %v681_v12 }
  0xb1   :  { %248 = vadd.xlane.f32.xlu0 %v247_v10  ;;  %245 = vadd.xlane.f32.xlu1 %v244_v11  ;;  %v425_v11 = vsub.s32 %v422_v1, %v681_v12 }
  0xb5   :  { %384 = vadd.xlane.f32.xlu0 %v383_v15  ;;  %381 = vadd.xlane.f32.xlu1 %v380_v16 }
  0xc6   :  { %398 = vbcast.lane.b32.xlu1 %v546_v17, 264 }
  0xcb   :  { %394 = vbcast.lane.b32.xlu0 %v546_v17, 256 }
 0x12d   :  { %v103_v23 = vpop.xlane.xlu1 %102  ;;  %v106_v24 = vpop.xlane.xlu0 %105 }
 0x12e   :  { %v128_v25 = vadd.f32 %v121_v18, %v103_v23  ;;  %v129_v26 = vadd.f32 %v125_v22, %v106_v24 }
 0x130   :  { %137 = vperm.xlu0 %562, %v128_v25   ;;  %140 = vperm.xlu1 %563, %v129_v26  }
 0x132   :  { %v240_v27 = vpop.xlane.xlu1 %239  ;;  %v243_v28 = vpop.xlane.xlu0 %242 }
 0x133   :  { %v266_v29 = vadd.f32 %v259_v20, %v240_v27  ;;  %v267_v31 = vadd.f32 %v263_v21, %v243_v28 }
 0x135   :  { %275 = vperm.xlu1 %563, %v266_v29   ;;  %278 = vperm.xlu0 %562, %v267_v31  }
 0x136   :  { %v376_v32 = vpop.xlane.xlu1 %375  ;;  %v379_v33 = vpop.xlane.xlu0 %378 }
 0x13a   :  { %v109_v34 = vpop.xlane.xlu1 %108  ;;  %v112_v35 = vpop.xlane.xlu0 %111 }
 0x13b   :  { %v130_v44 = vadd.f32 %v121_v18, %v109_v34  ;;  %v131_v45 = vadd.f32 %v125_v22, %v112_v35 }
 0x13e   :  { %v246_v36 = vpop.xlane.xlu1 %245  ;;  %v249_v37 = vpop.xlane.xlu0 %248 }
 0x13f   :  { %v268_v46 = vadd.f32 %v259_v20, %v246_v36  ;;  %v269_v47 = vadd.f32 %v263_v21, %v249_v37 }
 0x142   :  { %v382_v38 = vpop.xlane.xlu1 %381  ;;  %v385_v39 = vpop.xlane.xlu0 %384 }
 0x146   :  { %v399_v40 = vpop.permute.xlu1 %398  ;;  %v395_v41 = vpop.permute.xlu0 %394 }
 0x147   :  { %v403_v42 = vadd.f32 %v399_v40, %v379_v33  ;;  %v402_v43 = vadd.f32 %v395_v41, %v376_v32  ;;  %v405_v48 = vadd.f32 %v399_v40, %v385_v39  ;;  %v404_v49 = vadd.f32 %v395_v41, %v382_v38  ;;  %v466_v38 = vld [vmem:[%s790_s1 + $0x8] sm:$0xff]  ;;  %s515_s1 = sshll.u32 %s609_s28, 4  ;;  %s516_s1 = int_to_ptr.vmem [resolvable:$true] %s515_s1 }
 0x148   :  { %468 = vst.msk [vmem:[#allocation5 + $0x8] sm:$0xff] %vm100_vm0, %v466_v38  ;;  %s576_s4 = scalar_lea.vmem %s516_s1, 256  ;;  %p581_p6 = scmp.lt.s32.totalorder %s516_s1, %s516_s1 }
 0x149   :  { %414 = vperm.xlu0 %562, %v403_v42   ;;  %411 = vperm.xlu1 %563, %v402_v43   ;;  %p577_p5 = scmp.ne.s32.totalorder %s516_s1, %s576_s4  ;;  %p582_p7 = scmp.lt.s32.totalorder %s576_s4, %s576_s4 }
 0x14b   :  { %p583_p8 = por %p582_p7, %p581_p6 }
 0x14d   :  { %146 = vperm.xlu0 %562, %v131_v45   ;;  %143 = vperm.xlu1 %563, %v130_v44   ;;  %p584_p9 = pnand %p583_p8, %p577_p5 }
 0x151   :  { %284 = vperm.xlu0 %562, %v269_v47   ;;  %281 = vperm.xlu1 %563, %v268_v46  }
 0x155   :  { %420 = vperm.xlu0 %562, %v405_v48   ;;  %417 = vperm.xlu1 %563, %v404_v49  }
 0x159   :  { %461 = vrot.lane.b32.xlu0 %v459_v50, %s607_s23  ;;  %451 = vrot.lane.b32.xlu1 %v449_v51, %s607_s23 }
 0x1af   :  { %v141_v53 = vpop.permute.xlu1 %140  ;;  %v138_v54 = vpop.permute.xlu0 %137 }
 0x1b0   :  { %v158_v3 = vrot.slane %v141_v53, %v157_v59  ;;  %v153_v4 = vrot.slane %v138_v54, %v152_v60 }
 0x1b2   :  { %v160_v14 = vsel %vm159_vm1, %v158_v3, %v153_v4 }
 0x1b4   :  { %v276_v57 = vpop.permute.xlu1 %275  ;;  %v279_v58 = vpop.permute.xlu0 %278 }
 0x1b5   :  { %v290_v15 = vrot.slane %v276_v57, %v289_v5  ;;  %v295_v16 = vrot.slane %v279_v58, %v294_v6 }
 0x1b7   :  { %v297_v24 = vsel %vm296_vm4, %v295_v16, %v290_v15 }
 0x1c8   :  { %v412_v63 = vpop.permute.xlu1 %411  ;;  %v415_v0 = vpop.permute.xlu0 %414 }
 0x1c9   :  { %v426_v25 = vrot.slane %v412_v63, %v425_v11  ;;  %v431_v26 = vrot.slane %v415_v0, %v430_v13 }
 0x1cb   :  { %v433_v33 = vsel %vm432_vm6, %v431_v26, %v426_v25 }
 0x1cc   :  { %v144_v8 = vpop.permute.xlu1 %143  ;;  %v147_v7 = vpop.permute.xlu0 %146 }
 0x1cd   :  { %v164_v9 = vrot.slane %v144_v8, %v152_v60  ;;  %v168_v10 = vrot.slane %v147_v7, %v157_v59 }
 0x1cf   :  { %v169_v17 = vsel %vm159_vm1, %v168_v10, %v164_v9 }
 0x1d0   :  { %v171_v18 = vsel %vm170_vm2, %v169_v17, %v160_v14  ;;  %v282_v20 = vpop.permute.xlu1 %281  ;;  %v285_v21 = vpop.permute.xlu0 %284 }
 0x1d1   :  { %174 = vst.msk [vmem:[#allocation2] sm:$0x3] %vm173_vm3, %v171_v18  ;;  %v301_v22 = vrot.slane %v282_v20, %v289_v5  ;;  %v305_v23 = vrot.slane %v285_v21, %v294_v6 }
 0x1d3   :  { %v306_v27 = vsel %vm296_vm4, %v305_v23, %v301_v22 }
 0x1d4   :  { %v307_v12 = vsel %vm170_vm2, %v306_v27, %v297_v24  ;;  %v418_v28 = vpop.permute.xlu1 %417  ;;  %v421_v29 = vpop.permute.xlu0 %420 }
 0x1d5   :  { %v437_v31 = vrot.slane %v418_v28, %v425_v11  ;;  %v441_v32 = vrot.slane %v421_v29, %v430_v13  ;;  %310 = vst.msk [vmem:[#allocation2] sm:$0x3] %vm309_vm5, %v307_v12 }
 0x1d7   :  { %v442_v34 = vsel %vm432_vm6, %v441_v32, %v437_v31 }
 0x1d8   :  { %v452_v35 = vpop.permute.xlu1 %451  ;;  %v443_v36 = vsel %vm170_vm2, %v442_v34, %v433_v33  ;;  %v462_v37 = vpop.permute.xlu0 %461 }
 0x1d9   :  { %446 = vst.msk [vmem:[#allocation2] sm:$0x3] %vm445_vm7, %v443_v36 }
 0x1da   :  { %455 = vst.msk [vmem:[#allocation2] sm:$0x1] %vm454_vm8, %v452_v35  ;;  %464 = vst.msk [vmem:[#allocation2 + $0x1] sm:$0x1] %vm454_vm8, %v462_v37 }
 0x1e1   :  { %v548_v39 = vld.sshfl [vmem:[#allocation2] sm:$0x11 pattern:$0x75316420] }
 0x1e2   :  { %v485_v40 = vrot.slane %v548_v39, %v690_v19  ;;  %v478_v41 = vcombine.high %v548_v39, %v548_v39 }
 0x1e4   :  { %v496_v42 = vrot.slane %v485_v40, %v701_v30  ;;  %v492_v43 = vrot.slane %v478_v41, %v690_v19 }
 0x1e6   :  { %501 = vrot.lane.b32.xlu1 %v496_v42, %s608_s27  ;;  %v500_v44 = vrot.slane %v492_v43, %v701_v30 }
 0x1e8   :  { %503 = vrot.lane.b32.xlu0 %v500_v44, %s608_s27 }
 0x258   :  { %v502_v45 = vpop.permute.xlu1 %501 }
 0x259   :  { %508 = vst.msk [vmem:[#allocation5] sm:$0xff] %vm507_vm9, %v502_v45 }
 0x25a   :  { %v504_v46 = vpop.permute.xlu0 %503 }
 0x25b   :  { %509 = vst.msk [vmem:[#allocation5 + $0x8] sm:$0xff] %vm507_vm9, %v504_v46 }
 0x25c   :  { %587 = shalt.err (!%p584_p9)
}
 0x25d   :  { %s588_s5 = scalar_lea.hbm %s798_s9, 256 }
 0x25e   :  { %p589_p10 = scmp.ne.s32.totalorder %s798_s9, %s588_s5  ;;  %p592_p11 = scmp.lt.u32.totalorder %s588_s5, %s798_s9 }
 0x260   :  { %p594_p12 = pnand %p592_p11, %p589_p10 }
 0x262   :  { %597 = shalt.err (!%p594_p12)
}
 0x263   :  { %s610_s8 = smov 128   ;;  %s611_s14 = smov 8  }
 0x264   :  { %521 = dma.vmem_to_hbm [thread:$0]  %s516_s1, 256, %s798_s9, [#allocation6], %s610_s8, %s610_s8, %s611_s14  }
 0x265   :  { %600 = dma.done.wait [#allocation6], 256  }
 0x266   :  { %601 = vsyncadd [#allocation6], 4294967040 }
 0x267   :  { %525 = vsyncpa [#allocation6], 1 }

</bundles_post_ra>
